<compile_context>
chip_gen: v5e
topology: v5e:2x2
jax: 0.10.0
libtpu: 0.0.40
codegen_flags: <defaults>
</compile_context>

<pallas_src>
import jax
import jax.numpy as jnp
from jax.experimental import pallas as pl
from jax.experimental.pallas import tpu as pltpu


# ---------------------------------------------------------------------------
# Mish: x * tanh(softplus(x)), numerically stable; exp/log1p/tanh live on the EUP.
# ---------------------------------------------------------------------------
def _mish(x):
    sp = jnp.maximum(x, 0.0) + jnp.log1p(jnp.exp(-jnp.abs(x)))
    return x * jnp.tanh(sp)


# ---------------------------------------------------------------------------
# Small / fused path: single MXU push, single lane-dense [B, 2E] store.
# ---------------------------------------------------------------------------
def _dense_film_small_kernel(pos_ref, w_ref, b_ref, out_ref):
    h = _mish(pos_ref[...].astype(jnp.float32))                    # [B, E]
    out_ref[...] = (
        jnp.dot(h.astype(w_ref.dtype), w_ref[...],
                preferred_element_type=jnp.float32)
        + b_ref[...].astype(jnp.float32)
    ).astype(out_ref.dtype)                                        # [B, 2E]


def _dense_film_small(position, w, b):
    B, E = position.shape
    vmem = pl.BlockSpec(memory_space=pltpu.MemorySpace.VMEM)
    out = pl.pallas_call(
        _dense_film_small_kernel,
        out_shape=jax.ShapeDtypeStruct((B, 2 * E), jnp.float32),
        in_specs=[vmem, vmem, vmem],
        out_specs=vmem,
    )(position, w, b)

    # rearrange 'b c -> b 1 c' + chunk(2, -1). At E=64 we keep one [B, 128] block
    # (splitting inside the kernel would create 64-lane masked stores); the slice
    # below is a small XLA lane-shift copy, accepted at this size.
    pos_encoding = out[:, None, :]
    return pos_encoding[..., :E], pos_encoding[..., E:]


# ---------------------------------------------------------------------------
# Tiled path: batch-parallel grid, K-last accumulation, split lane-dense outputs.
# ---------------------------------------------------------------------------
def _dense_film_tiled_kernel(x_ref, ws_ref, wh_ref, bs_ref, bh_ref,
                             scale_ref, shift_ref, acc_s_ref, acc_h_ref):
    k = pl.program_id(2)

    @pl.when(k == 0)
    def _init():
        acc_s_ref[...] = jnp.zeros_like(acc_s_ref)
        acc_h_ref[...] = jnp.zeros_like(acc_h_ref)

    # Mish on the activation tile (EUP; cheap, recomputed per N-tile), then cast to
    # the weight dtype so bf16-stored W uses the bf16 MXU path; accumulate in f32.
    h = _mish(x_ref[...].astype(jnp.float32)).astype(ws_ref.dtype)
    acc_s_ref[...] += jnp.dot(h, ws_ref[...], preferred_element_type=jnp.float32)
    acc_h_ref[...] += jnp.dot(h, wh_ref[...], preferred_element_type=jnp.float32)

    @pl.when(k == pl.num_programs(2) - 1)
    def _finalize():
        # Bias only in the epilogue: keeps the hot K loop a pure dot.
        scale_ref[...] = (acc_s_ref[...] + bs_ref[...].astype(jnp.float32)
                          ).astype(scale_ref.dtype)
        shift_ref[...] = (acc_h_ref[...] + bh_ref[...].astype(jnp.float32)
                          ).astype(shift_ref.dtype)


def _pick_tile(dim, candidates):
    for c in candidates:
        if c <= dim and dim % c == 0:
            return c
    return dim


def _dense_film_tiled(position, w, b, *, tiles=None):
    B, E = position.shape
    assert B % 8 == 0 and E % 128 == 0, "tiled path needs B%8==0 and E%128==0"

    if tiles is None:
        tm = _pick_tile(B, (512, 256, 128, 64, 32, 16, 8))
        tn = _pick_tile(E, (512, 256, 128))   # prefer >=256: full v6e/v7x MXU width
        tk = _pick_tile(E, (512, 256, 128))
    else:
        tm, tn, tk = tiles
    assert B % tm == 0 and E % tn == 0 and E % tk == 0

    # Split the projection so the kernel emits two lane-dense [B, E] outputs and the
    # wrapper never lane-shifts a [B, 2E] slab.
    # TODO(synk): store the weights pre-split in the surrounding model to avoid this
    # per-call (trace-time) slice.
    ws, wh = w[:, :E], w[:, E:]
    bs, bh = b[:, :E], b[:, E:]

    grid = (B // tm, E // tn, E // tk)
    out_dtype = position.dtype

    scale, shift = pl.pallas_call(
        _dense_film_tiled_kernel,
        out_shape=(jax.ShapeDtypeStruct((B, E), out_dtype),
                   jax.ShapeDtypeStruct((B, E), out_dtype)),
        grid_spec=pltpu.PrefetchScalarGridSpec(
            num_scalar_prefetch=0,
            grid=grid,
            in_specs=[
                pl.BlockSpec((tm, tk), lambda i, j, k: (i, k)),   # x
                pl.BlockSpec((tk, tn), lambda i, j, k: (k, j)),   # W_scale
                pl.BlockSpec((tk, tn), lambda i, j, k: (k, j)),   # W_shift
                pl.BlockSpec((1, tn), lambda i, j, k: (0, j)),    # b_scale
                pl.BlockSpec((1, tn), lambda i, j, k: (0, j)),    # b_shift
            ],
            out_specs=[
                pl.BlockSpec((tm, tn), lambda i, j, k: (i, j)),
                pl.BlockSpec((tm, tn), lambda i, j, k: (i, j)),
            ],
            scratch_shapes=[pltpu.VMEM((tm, tn), jnp.float32),
                            pltpu.VMEM((tm, tn), jnp.float32)],
        ),
        compiler_params=pltpu.CompilerParams(
            dimension_semantics=("parallel", "parallel", "arbitrary")),
    )(position, ws, wh, bs, bh)

    return scale[:, None, :], shift[:, None, :]


# ---------------------------------------------------------------------------
# Public wrapper / dispatcher.
# ---------------------------------------------------------------------------
def dense_film(position, w, b, *, force_tiled=None, tiles=None):
    """position: [B, E]; w: [E, 2E] (in, out; f32 or bf16); b: [1, 2E].

    Returns (scale, shift), each [B, 1, E], matching the PyTorch module.
    """
    B, E = position.shape
    assert w.shape == (E, 2 * E) and b.shape == (1, 2 * E)

    use_tiled = force_tiled
    if use_tiled is None:
        shapes_ok = (B % 8 == 0) and (E % 128 == 0)
        big_enough = (E * 2 * E * w.dtype.itemsize + B * E * 4) > (4 << 20)
        use_tiled = shapes_ok and big_enough

    if use_tiled:
        return _dense_film_tiled(position, w, b, tiles=tiles)
    return _dense_film_small(position, w, b)


# ---------------------------------------------------------------------------
# Pure-JAX reference mirroring the PyTorch forward.
# ---------------------------------------------------------------------------
def reference(position, w, b):
    h = position * jnp.tanh(jax.nn.softplus(position))
    out = h @ w + b[0]
    pos_encoding = out[:, None, :]
    E = position.shape[-1]
    return pos_encoding[..., :E], pos_encoding[..., E:]


def init_params(key, embed_channels):
    E = embed_channels
    k_w, k_b = jax.random.split(key)
    sd = 0.05
    # Weight stored as [in, out] (transpose of PyTorch's [out, in]); bias [1, 2E].
    w = sd * jax.random.normal(k_w, (E, 2 * E), jnp.float32)
    b = sd * jax.random.normal(k_b, (1, 2 * E), jnp.float32)
    return w, b


if __name__ == "__main__":
    key = jax.random.PRNGKey(0)
    k_x1, k_p1, k_x2, k_p2 = jax.random.split(key, 4)

    # ---- 1. Small / fused path (the module's typical size): B=2, E=64 ----
    B1, E1 = 2, 64
    position1 = jax.random.normal(k_x1, (B1, E1), jnp.float32)
    w1, b1 = init_params(k_p1, E1)

    scale1, shift1 = dense_film(position1, w1, b1)
    scale1 = jax.block_until_ready(scale1)
    shift1 = jax.block_until_ready(shift1)

    ref_scale1, ref_shift1 = reference(position1, w1, b1)
    assert scale1.shape == (B1, 1, E1) and shift1.shape == (B1, 1, E1)
    assert jnp.allclose(scale1, ref_scale1, atol=1e-4, rtol=1e-4), "small scale mismatch"
    assert jnp.allclose(shift1, ref_shift1, atol=1e-4, rtol=1e-4), "small shift mismatch"

    # ---- 2. Tiled path (batch-parallel grid + K accumulation + split outputs) ----
    B2, E2 = 16, 256
    position2 = jax.random.normal(k_x2, (B2, E2), jnp.float32)
    w2, b2 = init_params(k_p2, E2)

    scale2, shift2 = dense_film(position2, w2, b2, force_tiled=True,
                                tiles=(8, 128, 128))  # small tiles to exercise the grid
    scale2 = jax.block_until_ready(scale2)
    shift2 = jax.block_until_ready(shift2)

    ref_scale2, ref_shift2 = reference(position2, w2, b2)
    assert scale2.shape == (B2, 1, E2) and shift2.shape == (B2, 1, E2)
    assert jnp.allclose(scale2, ref_scale2, atol=1e-4, rtol=1e-4), "tiled scale mismatch"
    assert jnp.allclose(shift2, ref_shift2, atol=1e-4, rtol=1e-4), "tiled shift mismatch"

    # ---- 3. bf16-stored W (v5e/v6e HBM-bandwidth optimization), relaxed tolerance ----
    scale3, shift3 = dense_film(position2, w2.astype(jnp.bfloat16), b2,
                                force_tiled=True, tiles=(8, 128, 128))
    scale3 = jax.block_until_ready(scale3)
    shift3 = jax.block_until_ready(shift3)
    assert jnp.allclose(scale3, ref_scale2, atol=3e-2, rtol=3e-2), "bf16 scale mismatch"
    assert jnp.allclose(shift3, ref_shift2, atol=3e-2, rtol=3e-2), "bf16 shift mismatch"

    print("KERNEL_OK")
</pallas_src>

<mosaic_0001>
module attributes {stable_mosaic.version = 11 : i64} {
  func.func @_dense_film_small_kernel(%arg0: memref<2x64xf32, #tpu.memory_space<vmem>>, %arg1: memref<64x128xf32, #tpu.memory_space<vmem>>, %arg2: memref<1x128xf32, #tpu.memory_space<vmem>>, %arg3: memref<2x128xf32, #tpu.memory_space<vmem>>) attributes {dimension_semantics = [], scalar_prefetch = 0 : i64, scratch_operands = 0 : i64, tpu.core_type = #tpu.core_type<tc>} {
    %c0 = arith.constant 0 : index
    %c0_0 = arith.constant 0 : index
    %0 = vector.load %arg0[%c0, %c0_0] : memref<2x64xf32, #tpu.memory_space<vmem>>, vector<2x64xf32>
    %cst = arith.constant 0.000000e+00 : f32
    %1 = vector.broadcast %cst : f32 to vector<2x64xf32>
    %2 = arith.maximumf %0, %1 : vector<2x64xf32>
    %3 = math.absf %0 : vector<2x64xf32>
    %cst_1 = arith.constant 0.000000e+00 : f32
    %4 = vector.broadcast %cst_1 : f32 to vector<2x64xf32>
    %5 = arith.subf %4, %3 : vector<2x64xf32>
    %6 = math.exp %5 : vector<2x64xf32>
    %7 = math.log1p %6 : vector<2x64xf32>
    %8 = arith.addf %2, %7 : vector<2x64xf32>
    %9 = math.tanh %8 : vector<2x64xf32>
    %10 = arith.mulf %0, %9 : vector<2x64xf32>
    %c0_2 = arith.constant 0 : index
    %c0_3 = arith.constant 0 : index
    %11 = vector.load %arg1[%c0_2, %c0_3] : memref<64x128xf32, #tpu.memory_space<vmem>>, vector<64x128xf32>
    %cst_4 = arith.constant dense<0.000000e+00> : vector<2x128xf32>
    %12 = tpu.matmul %10, %11, %cst_4 {dimension_numbers = #tpu.dot_dimension_numbers<[1], [0], [0], [1], [0, 0, 1, 1], [], []>} : vector<2x64xf32>, vector<64x128xf32>, vector<2x128xf32> -> vector<2x128xf32>
    %c0_5 = arith.constant 0 : index
    %c0_6 = arith.constant 0 : index
    %13 = vector.load %arg2[%c0_5, %c0_6] : memref<1x128xf32, #tpu.memory_space<vmem>>, vector<1x128xf32>
    %14 = vector.broadcast %13 : vector<1x128xf32> to vector<2x128xf32>
    %15 = arith.addf %12, %14 : vector<2x128xf32>
    %c0_7 = arith.constant 0 : index
    %c0_8 = arith.constant 0 : index
    %16 = vector.load %arg3[%c0_7, %c0_8] : memref<2x128xf32, #tpu.memory_space<vmem>>, vector<2x128xf32>
    tpu.vector_store %arg3[%c0_7, %c0_8], %15 {strides = array<i32>} : memref<2x128xf32, #tpu.memory_space<vmem>>, vector<2x128xf32>,
    return
  }
}

</mosaic_0001>

<bundles_post_ra>
// kernel: tpu_custom_call.1
= control target key start
LH: loop header
LB: loop body
LE: loop exit
PB: predicated region body
PF: predicated region fallthrough
CT: control target
= control target key end

     0   :  { %8 = vsyncpa [#allocation3], 0  ;;  %s246_s0 = inlined_call_operand.hbm [shape: f32[2,64], index: 0, kind: input, shape index: {}]   ;;  %s247_s1 = inlined_call_operand.hbm [shape: f32[64,128], index: 1, kind: input, shape index: {}]   ;;  %s248_s2 = inlined_call_operand.vmem [shape: f32[1,128], index: 2, kind: input, shape index: {}]   ;;  %s249_s3 = inlined_call_operand.hbm [shape: f32[2,128], index: 3, kind: output, shape index: {}]  }
   0x1   :  { %9 = vsyncpa [#allocation6], 0 }
   0x2   :  { %10 = vsyncpa [#allocation4], 0  ;;  %s16_s14 = sshll.u32 %s246_s0, 4  ;;  %s209_s15 = smov [#allocation2]   ;;  %s17_s14 = int_to_ptr.hbm [resolvable:$true] %s16_s14 }
   0x3   :  { %s18_s16 = sshll.u32 %s209_s15, 4  ;;  %s26_s19 = sshll.u32 %s247_s1, 4  ;;  %s19_s16 = int_to_ptr.vmem [resolvable:$true] %s18_s16  ;;  %s27_s19 = int_to_ptr.hbm [resolvable:$true] %s26_s19 }
   0x4   :  { %21 = dma.hbm_to_vmem [thread:$0]  %s17_s14, 32, %s19_s16, [#allocation3]  }
   0x5   :  { %s210_s20 = smov [#allocation5]   ;;  %s211_s22 = smov 128  }
   0x6   :  { %s28_s21 = sshll.u32 %s210_s20, 4  ;;  %s212_s23 = smov 8   ;;  %s29_s21 = int_to_ptr.vmem [resolvable:$true] %s28_s21 }
   0x7   :  { %34 = dma.hbm_to_vmem [thread:$0]  %s27_s19, 1024, %s29_s21, [#allocation6], %s211_s22, %s211_s22, %s212_s23  }
   0x8   :  { %203 = dma.done.wait [#allocation3], 32  }
   0x9   :  { %204 = vsyncadd [#allocation3], 4294967264 }
   0xa   :  { %205 = dma.done.wait [#allocation6], 1024  }
   0xb   :  { %206 = vsyncadd [#allocation6], 4294966272  ;;  %v70_v0 = vld [vmem:[#allocation5 + $0x38] sm:$0xff]  ;;  %v69_v1 = vld [vmem:[#allocation5 + $0x30] sm:$0xff]  ;;  %vm75_vm1 = vcmask 523264   ;;  %s213_s24 = smov [#allocation7]  }
   0xc   :  { %87 = vmatpush.msra.mxu0 %v70_v0  ;;  %v68_v2 = vld [vmem:[#allocation5 + $0x28] sm:$0xff]  ;;  %v45_v3 = vld [vmem:[#allocation2] sm:$0x3]  ;;  %v67_v5 = vld [vmem:[#allocation5 + $0x20] sm:$0xff]  ;;  %s105_s25 = sshll.u32 %s213_s24, 4  ;;  %s107_s28 = sshll.u32 %s249_s3, 4  ;;  %s106_s25 = int_to_ptr.vmem [resolvable:$true] %s105_s25  ;;  %s108_s28 = int_to_ptr.hbm [resolvable:$true] %s107_s28 }
   0xd   :  { %v47_v4 = vand.u32 2147483647, %v45_v3  ;;  %v66_v7 = vld [vmem:[#allocation5 + $0x18] sm:$0xff]  ;;  %v65_v9 = vld [vmem:[#allocation5 + $0x10] sm:$0xff]  ;;  %v64_v10 = vld [vmem:[#allocation5 + $0x8] sm:$0xff]  ;;  %v46_v19 = vmax.f32 %v45_v3, 0.0 }
   0xe   :  { %88 = vmatpush.msra.mxu0 %v69_v1  ;;  %v63_v11 = vld [vmem:[#allocation5] sm:$0xff]  ;;  %v124_v25 = vld [vmem:[%s248_s2] ss:$0 sm:$0xff] }
   0xf   :  { %v48_v6 = vsub.f32 0.0, %v47_v4 }
  0x10   :  { %89 = vmatpush.msra.mxu0 %v68_v2 }
  0x11   :  { %v49_v8 = vmul.f32 1.442695, %v48_v6 }
  0x12   :  { %90 = vmatpush.msra.mxu0 %v67_v5 }
  0x13   :  { %125 = vpow2.f32 %v49_v8 }
  0x14   :  { %91 = vmatpush.msra.mxu0 %v66_v7 }
  0x16   :  { %92 = vmatpush.msra.mxu0 %v65_v9 }
  0x18   :  { %93 = vmatpush.msra.mxu0 %v64_v10 }
  0x19   :  { %v126_v12 = vpop.eup %125 }
  0x1a   :  { %94 = vmatpush.msra.mxu0 %v63_v11  ;;  %v51_v13 = vadd.f32 1.0, %v126_v12  ;;  %v54_v14 = vmul.f32 -0.5, %v126_v12  ;;  %v57_v16 = vand.u32 2147483647, %v126_v12 }
  0x1c   :  { %127 = vlog2.f32 %v51_v13  ;;  %v55_v15 = vadd.f32 1.0, %v54_v14  ;;  %vm58_vm0 = vcmp.lt.f32.partialorder %v57_v16, 0.0004427343 }
  0x1e   :  { %v56_v17 = vmul.f32 %v126_v12, %v55_v15 }
  0x22   :  { %v128_v18 = vpop.eup %127 }
  0x23   :  { %v53_v20 = vmul.f32 0.6931472, %v128_v18 }
  0x25   :  { %v59_v21 = vsel %vm58_vm0, %v56_v17, %v53_v20 }
  0x26   :  { %v60_v22 = vadd.f32 %v59_v21, %v46_v19 }
  0x28   :  { %129 = vtanh.f32 %v60_v22 }
  0x2e   :  { %v130_v23 = vpop.eup %129 }
  0x2f   :  { %v62_v24 = vmul.f32 %v130_v23, %v45_v3 }
  0x31   :  { %118 = vmatmul.msk.f32.vlgmr.msra.gmra.mxu0 %vm75_vm1, %v62_v24 }
  0xae   :  { %v96_v26 = vpop.f32.mrf.mxu0 }
  0xaf   :  { %v97_v27 = vadd.f32 %v124_v25, %v96_v26 }
  0xb1   :  { %99 = vst [vmem:[#allocation7] sm:$0x3] %v97_v27 }
  0xb2   :  { %110 = dma.vmem_to_hbm [thread:$0]  %s106_s25, 32, %s108_s28, [#allocation4]  }
  0xb3   :  { %207 = dma.done.wait [#allocation4], 32  }
  0xb4   :  { %208 = vsyncadd [#allocation4], 4294967264 }
  0xb5   :  { %115 = vsyncpa [#allocation3], 1 }
  0xb6   :  { %116 = vsyncpa [#allocation6], 1 }
  0xb7   :  { %117 = vsyncpa [#allocation4], 1 }

</bundles_post_ra>
